<compile_context>
chip_gen: v5e
topology: v5e:2x2
jax: 0.10.0
libtpu: 0.0.40
codegen_flags: <defaults>
</compile_context>

<pallas_src>
import functools

import jax
import jax.numpy as jnp
import numpy as np
from jax.experimental import pallas as pl
from jax.experimental.pallas import tpu as pltpu

EPS = 1e-5  # torch BatchNorm2d default


def bottleneck_kernel(x_ref, p_ref, mask_ref, o_ref, *, C, P, W, eps):
    # x_ref: (C, M) f32 with M = N*H*W on the lane axis (multiple of 128).
    # p_ref: (C, C+10P+6) f32 packed parameter slab (w1 | w2_packed | w3 | BN g/b).
    # mask_ref: (9, M) f32 precomputed 3x3 boundary-validity masks.
    M = x_ref.shape[1]
    inv_m = 1.0 / float(M)

    x = x_ref[...]                      # f32 (C, M), kept for the residual add
    x_bf = x.astype(jnp.bfloat16)       # bf16 copy for the MXU

    # Static column offsets into the packed parameter slab.
    c_w2 = C
    c_w3 = C + 9 * P
    c_bn = C + 10 * P

    w1 = p_ref[0:P, 0:C].astype(jnp.bfloat16)                 # (P, C)
    w2 = p_ref[0:P, c_w2:c_w2 + 9 * P].astype(jnp.bfloat16)   # (P, 9P), (ky,kx,in) order
    w3 = p_ref[0:C, c_w3:c_w3 + P].astype(jnp.bfloat16)       # (C, P)   (C == 4P)
    g1 = p_ref[0:P, c_bn + 0:c_bn + 1]
    b1 = p_ref[0:P, c_bn + 1:c_bn + 2]
    g2 = p_ref[0:P, c_bn + 2:c_bn + 3]
    b2 = p_ref[0:P, c_bn + 3:c_bn + 4]
    g3 = p_ref[0:C, c_bn + 4:c_bn + 5]
    b3 = p_ref[0:C, c_bn + 5:c_bn + 6]

    def batchnorm(h, g, b):
        # Training-mode BN over all M = N*H*W positions.  E[x] and E[x^2] reduced
        # with ONE cross-lane sum (concat along sublanes); biased variance, clamped
        # at 0 to guard E[x^2]-mean^2 cancellation; eps = 1e-5.
        c = h.shape[0]
        s = jnp.sum(jnp.concatenate([h, h * h], axis=0),
                    axis=1, keepdims=True) * inv_m            # (2c, 1)
        mean, ex2 = s[:c], s[c:]
        var = jnp.maximum(ex2 - mean * mean, 0.0)
        return (h - mean) * jax.lax.rsqrt(var + eps) * g + b

    # ---- conv1: 1x1 (C -> P) on the MXU, BN1, ReLU ----------------------------
    h1 = jnp.dot(w1, x_bf, preferred_element_type=jnp.float32)          # (P, M)
    h1 = jnp.maximum(batchnorm(h1, g1, b1), 0.0)

    # ---- conv2: 3x3 / pad=1 (P -> P) as ONE fused MXU matmul ------------------
    # Each tap = XLU lane roll of h1 by the flattened spatial offset, zeroed at
    # image borders by the precomputed mask; the 9 taps are stacked along sublanes
    # into a (9P, M) RHS and contracted in a single (P, 9P) @ (9P, M) matmul.
    taps = []
    for t in range(9):
        dy, dx = t // 3 - 1, t % 3 - 1
        d = dy * W + dx                          # flat column offset of this tap
        rolled = pltpu.roll(h1, shift=(-d) % M, axis=1) if d != 0 else h1
        taps.append(rolled * mask_ref[t:t + 1, :])
    rhs = jnp.concatenate(taps, axis=0).astype(jnp.bfloat16)            # (9P, M)
    h2 = jnp.dot(w2, rhs, preferred_element_type=jnp.float32)           # (P, M)
    h2 = jnp.maximum(batchnorm(h2, g2, b2), 0.0)

    # ---- conv3: 1x1 (P -> 4P), BN3, residual add, ReLU ------------------------
    h3 = jnp.dot(w3, h2.astype(jnp.bfloat16),
                 preferred_element_type=jnp.float32)                    # (C, M)
    h3 = batchnorm(h3, g3, b3)

    # Dense (C, M) store — full lane width, no masked partial vst.
    o_ref[...] = jnp.maximum(h3 + x, 0.0).astype(o_ref.dtype)


def alpha_bottleneck(x_nchw, params):
    N, C, H, W = x_nchw.shape
    P = params['w2'].shape[0]        # planes
    M = N * H * W

    # NCHW -> (C, N*H*W): (N, C) axis swap + reshape.  Channels land on sublanes,
    # the flattened batch*spatial index (multiple of 128) lands on the lane axis,
    # so all kernel loads/stores are lane-dense.
    x_t = jnp.transpose(x_nchw, (1, 0, 2, 3)).reshape(C, M).astype(jnp.float32)

    # Packed parameter slab: one VMEM tile, one DMA.
    #   cols [0, C)            : w1            (rows 0:P)
    #   cols [C, C+9P)         : w2 packed     (rows 0:P), (out, (ky,kx,in)) order
    #   cols [C+9P, C+10P)     : w3            (rows 0:C)
    #   cols [C+10P, C+10P+6)  : g1 b1 g2 b2 g3 b3 (one column each)
    n_cols = C + 10 * P + 6
    w2p = jnp.transpose(params['w2'], (0, 2, 3, 1)).reshape(P, 9 * P)
    slab = jnp.zeros((C, n_cols), jnp.float32)
    slab = slab.at[:P, :C].set(params['w1'].astype(jnp.float32))
    slab = slab.at[:P, C:C + 9 * P].set(w2p.astype(jnp.float32))
    slab = slab.at[:, C + 9 * P:C + 10 * P].set(params['w3'].astype(jnp.float32))
    cb = C + 10 * P
    for i, name in enumerate(['g1', 'b1', 'g2', 'b2', 'g3', 'b3']):
        v = params[name].astype(jnp.float32)
        slab = slab.at[:v.shape[0], cb + i].set(v)

    # Precomputed 3x3 boundary-validity masks: pure compile-time layout plumbing.
    cols = np.arange(M)
    hh = (cols // W) % H
    ww = cols % W
    mask_np = np.zeros((9, M), np.float32)
    for t in range(9):
        dy, dx = t // 3 - 1, t % 3 - 1
        valid = ((hh + dy >= 0) & (hh + dy < H) & (ww + dx >= 0) & (ww + dx < W))
        mask_np[t] = valid.astype(np.float32)
    masks = jnp.asarray(mask_np)

    vmem = lambda: pl.BlockSpec(memory_space=pltpu.MemorySpace.VMEM)
    out_t = pl.pallas_call(
        functools.partial(bottleneck_kernel, C=C, P=P, W=W, eps=EPS),
        out_shape=jax.ShapeDtypeStruct((C, M), jnp.float32),
        in_specs=[vmem(), vmem(), vmem()],
        out_specs=vmem(),
        # Residual input buffer is reused as the output HBM buffer.
        input_output_aliases={0: 0},
    )(x_t, slab, masks)

    # NOTE: for real ResNet shapes (e.g. 56x56x256) this monolithic no-grid design
    # must become a halo-aware grid over (N, H-tiles) with cross-tile BN stats,
    # "parallel" batch/spatial axes (2 TCs on v7x) and an explicit vmem_limit_bytes
    # sized for 64 MiB/TC on v7x (16 MiB default scoped VMEM on v5e).
    return jnp.transpose(out_t.reshape(C, N, H, W), (1, 0, 2, 3))        # back to NCHW


def reference(x_nchw, params, mxu_dtype):
    """Pure-JAX mirror of the torch forward (training-mode BN).  Conv inputs and
    weights are cast to `mxu_dtype` with f32 accumulation so the same function
    serves as both the mixed-precision-matched and the pure-f32 reference."""
    f32 = jnp.float32
    x = x_nchw.astype(f32)

    def conv(inp, w, padding):
        return jax.lax.conv_general_dilated(
            inp.astype(mxu_dtype), w.astype(mxu_dtype), (1, 1), padding,
            dimension_numbers=('NCHW', 'OIHW', 'NCHW'),
            preferred_element_type=f32)

    def bn(h, g, b):
        mean = jnp.mean(h, axis=(0, 2, 3), keepdims=True)
        var = jnp.mean((h - mean) ** 2, axis=(0, 2, 3), keepdims=True)
        return ((h - mean) * jax.lax.rsqrt(var + EPS)
                * g.reshape(1, -1, 1, 1) + b.reshape(1, -1, 1, 1))

    w1 = params['w1'][:, :, None, None]
    w3 = params['w3'][:, :, None, None]
    h1 = jax.nn.relu(bn(conv(x, w1, 'VALID'), params['g1'], params['b1']))
    h2 = jax.nn.relu(bn(conv(h1, params['w2'], [(1, 1), (1, 1)]),
                        params['g2'], params['b2']))
    h3 = bn(conv(h2, w3, 'VALID'), params['g3'], params['b3'])
    return jax.nn.relu(h3 + x)


def make_params(key, inplanes, planes):
    ks = jax.random.split(key, 9)
    f32 = jnp.float32
    return {
        # conv weights in native PyTorch layout: (out, in[, kh, kw]), bias=False
        'w1': (0.1 * jax.random.normal(ks[0], (planes, inplanes))).astype(f32),
        'w2': (0.1 * jax.random.normal(ks[1], (planes, planes, 3, 3))).astype(f32),
        'w3': (0.1 * jax.random.normal(ks[2], (planes * 4, planes))).astype(f32),
        # BN affine params, torch layout (C,)
        'g1': (1.0 + 0.1 * jax.random.normal(ks[3], (planes,))).astype(f32),
        'b1': (0.1 * jax.random.normal(ks[4], (planes,))).astype(f32),
        'g2': (1.0 + 0.1 * jax.random.normal(ks[5], (planes,))).astype(f32),
        'b2': (0.1 * jax.random.normal(ks[6], (planes,))).astype(f32),
        'g3': (1.0 + 0.1 * jax.random.normal(ks[7], (planes * 4,))).astype(f32),
        'b3': (0.1 * jax.random.normal(ks[8], (planes * 4,))).astype(f32),
    }


if __name__ == "__main__":
    key = jax.random.PRNGKey(0)
    kx, kp = jax.random.split(key)

    planes = 4
    inplanes = planes * 4          # identity residual (downsample=None) needs inplanes == planes*4
    N, H, W = 2, 16, 16            # N*H*W = 512 -> 4 vregs wide on the lane axis

    x = jax.random.normal(kx, (N, inplanes, H, W), dtype=jnp.float32)   # NCHW like torch
    params = make_params(kp, inplanes, planes)

    out = jax.jit(alpha_bottleneck)(x, params)
    out = jax.block_until_ready(out)

    # Tight check vs. a reference using the same precision policy (bf16 MXU inputs,
    # f32 accumulation / BN math).
    ref_bf16 = reference(x, params, jnp.bfloat16)
    np.testing.assert_allclose(np.asarray(out), np.asarray(ref_bf16), rtol=1e-2, atol=1e-2)

    # Fidelity check vs. the pure-f32 torch forward (bf16 MXU inputs add ~1% noise).
    ref_f32 = reference(x, params, jnp.float32)
    np.testing.assert_allclose(np.asarray(out), np.asarray(ref_f32), rtol=5e-2, atol=5e-2)

    print("KERNEL_OK")
</pallas_src>

<mosaic_0001>
module attributes {stable_mosaic.version = 11 : i64} {
  func.func @bottleneck_kernel(%arg0: memref<16x512xf32, #tpu.memory_space<vmem>>, %arg1: memref<16x62xf32, #tpu.memory_space<vmem>>, %arg2: memref<9x512xf32, #tpu.memory_space<vmem>>, %arg3: memref<16x512xf32, #tpu.memory_space<vmem>>) attributes {dimension_semantics = [], scalar_prefetch = 0 : i64, scratch_operands = 0 : i64, tpu.core_type = #tpu.core_type<tc>} {
    %c0 = arith.constant 0 : index
    %c0_0 = arith.constant 0 : index
    %0 = vector.load %arg0[%c0, %c0_0] : memref<16x512xf32, #tpu.memory_space<vmem>>, vector<16x512xf32>
    %1 = arith.truncf %0 : vector<16x512xf32> to vector<16x512xbf16>
    %c0_1 = arith.constant 0 : index
    %c0_2 = arith.constant 0 : index
    %2 = vector.load %arg1[%c0_1, %c0_2] : memref<16x62xf32, #tpu.memory_space<vmem>>, vector<4x16xf32>
    %3 = arith.truncf %2 : vector<4x16xf32> to vector<4x16xbf16>
    %c0_3 = arith.constant 0 : index
    %c16 = arith.constant 16 : index
    %4 = vector.load %arg1[%c0_3, %c16] : memref<16x62xf32, #tpu.memory_space<vmem>>, vector<4x36xf32>
    %5 = arith.truncf %4 : vector<4x36xf32> to vector<4x36xbf16>
    %c0_4 = arith.constant 0 : index
    %c52 = arith.constant 52 : index
    %6 = vector.load %arg1[%c0_4, %c52] : memref<16x62xf32, #tpu.memory_space<vmem>>, vector<16x4xf32>
    %7 = arith.truncf %6 : vector<16x4xf32> to vector<16x4xbf16>
    %c0_5 = arith.constant 0 : index
    %c56 = arith.constant 56 : index
    %8 = vector.load %arg1[%c0_5, %c56] : memref<16x62xf32, #tpu.memory_space<vmem>>, vector<4x1xf32>
    %c0_6 = arith.constant 0 : index
    %c57 = arith.constant 57 : index
    %9 = vector.load %arg1[%c0_6, %c57] : memref<16x62xf32, #tpu.memory_space<vmem>>, vector<4x1xf32>
    %c0_7 = arith.constant 0 : index
    %c58 = arith.constant 58 : index
    %10 = vector.load %arg1[%c0_7, %c58] : memref<16x62xf32, #tpu.memory_space<vmem>>, vector<4x1xf32>
    %c0_8 = arith.constant 0 : index
    %c59 = arith.constant 59 : index
    %11 = vector.load %arg1[%c0_8, %c59] : memref<16x62xf32, #tpu.memory_space<vmem>>, vector<4x1xf32>
    %c0_9 = arith.constant 0 : index
    %c60 = arith.constant 60 : index
    %12 = vector.load %arg1[%c0_9, %c60] : memref<16x62xf32, #tpu.memory_space<vmem>>, vector<16x1xf32>
    %c0_10 = arith.constant 0 : index
    %c61 = arith.constant 61 : index
    %13 = vector.load %arg1[%c0_10, %c61] : memref<16x62xf32, #tpu.memory_space<vmem>>, vector<16x1xf32>
    %cst = arith.constant dense<0.000000e+00> : vector<4x512xf32>
    %14 = tpu.matmul %3, %1, %cst {dimension_numbers = #tpu.dot_dimension_numbers<[1], [0], [0], [1], [0, 0, 1, 1], [], []>} : vector<4x16xbf16>, vector<16x512xbf16>, vector<4x512xf32> -> vector<4x512xf32>
    %15 = arith.mulf %14, %14 : vector<4x512xf32>
    %16 = tpu.concatenate %14, %15 in 0 : vector<4x512xf32>, vector<4x512xf32> -> vector<8x512xf32>
    %cst_11 = arith.constant dense<0.000000e+00> : vector<8xf32>
    %17 = vector.multi_reduction <add>, %16, %cst_11 [1] : vector<8x512xf32> to vector<8xf32>
    %18 = vector.shape_cast %17 : vector<8xf32> to vector<8x1xf32>
    %cst_12 = arith.constant 0.001953125 : f32
    %19 = vector.broadcast %cst_12 : f32 to vector<8x1xf32>
    %20 = arith.mulf %18, %19 : vector<8x1xf32>
    %21 = vector.extract_strided_slice %20 {offsets = [0, 0], sizes = [4, 1], strides = [1, 1]} : vector<8x1xf32> to vector<4x1xf32>
    %22 = vector.extract_strided_slice %20 {offsets = [4, 0], sizes = [4, 1], strides = [1, 1]} : vector<8x1xf32> to vector<4x1xf32>
    %23 = arith.mulf %21, %21 : vector<4x1xf32>
    %24 = arith.subf %22, %23 : vector<4x1xf32>
    %cst_13 = arith.constant 0.000000e+00 : f32
    %25 = vector.broadcast %cst_13 : f32 to vector<4x1xf32>
    %26 = arith.maximumf %24, %25 : vector<4x1xf32>
    %27 = vector.broadcast %21 : vector<4x1xf32> to vector<4x512xf32>
    %28 = arith.subf %14, %27 : vector<4x512xf32>
    %cst_14 = arith.constant 9.99999974E-6 : f32
    %29 = vector.broadcast %cst_14 : f32 to vector<4x1xf32>
    %30 = arith.addf %26, %29 : vector<4x1xf32>
    %31 = math.rsqrt %30 : vector<4x1xf32>
    %32 = vector.broadcast %31 : vector<4x1xf32> to vector<4x512xf32>
    %33 = arith.mulf %28, %32 : vector<4x512xf32>
    %34 = vector.broadcast %8 : vector<4x1xf32> to vector<4x512xf32>
    %35 = arith.mulf %33, %34 : vector<4x512xf32>
    %36 = vector.broadcast %9 : vector<4x1xf32> to vector<4x512xf32>
    %37 = arith.addf %35, %36 : vector<4x512xf32>
    %cst_15 = arith.constant 0.000000e+00 : f32
    %38 = vector.broadcast %cst_15 : f32 to vector<4x512xf32>
    %39 = arith.maximumf %37, %38 : vector<4x512xf32>
    %c17_i32 = arith.constant 17 : i32
    %40 = tpu.dynamic_rotate %39 by %c17_i32 dim 1 : vector<4x512xf32>, i32 -> vector<4x512xf32>
    %c0_16 = arith.constant 0 : index
    %c0_17 = arith.constant 0 : index
    %41 = vector.load %arg2[%c0_16, %c0_17] : memref<9x512xf32, #tpu.memory_space<vmem>>, vector<1x512xf32>
    %42 = vector.broadcast %41 : vector<1x512xf32> to vector<4x512xf32>
    %43 = arith.mulf %40, %42 : vector<4x512xf32>
    %c16_i32 = arith.constant 16 : i32
    %44 = tpu.dynamic_rotate %39 by %c16_i32 dim 1 : vector<4x512xf32>, i32 -> vector<4x512xf32>
    %c1 = arith.constant 1 : index
    %c0_18 = arith.constant 0 : index
    %45 = vector.load %arg2[%c1, %c0_18] : memref<9x512xf32, #tpu.memory_space<vmem>>, vector<1x512xf32>
    %46 = vector.broadcast %45 : vector<1x512xf32> to vector<4x512xf32>
    %47 = arith.mulf %44, %46 : vector<4x512xf32>
    %c15_i32 = arith.constant 15 : i32
    %48 = tpu.dynamic_rotate %39 by %c15_i32 dim 1 : vector<4x512xf32>, i32 -> vector<4x512xf32>
    %c2 = arith.constant 2 : index
    %c0_19 = arith.constant 0 : index
    %49 = vector.load %arg2[%c2, %c0_19] : memref<9x512xf32, #tpu.memory_space<vmem>>, vector<1x512xf32>
    %50 = vector.broadcast %49 : vector<1x512xf32> to vector<4x512xf32>
    %51 = arith.mulf %48, %50 : vector<4x512xf32>
    %c1_i32 = arith.constant 1 : i32
    %52 = tpu.dynamic_rotate %39 by %c1_i32 dim 1 : vector<4x512xf32>, i32 -> vector<4x512xf32>
    %c3 = arith.constant 3 : index
    %c0_20 = arith.constant 0 : index
    %53 = vector.load %arg2[%c3, %c0_20] : memref<9x512xf32, #tpu.memory_space<vmem>>, vector<1x512xf32>
    %54 = vector.broadcast %53 : vector<1x512xf32> to vector<4x512xf32>
    %55 = arith.mulf %52, %54 : vector<4x512xf32>
    %c4 = arith.constant 4 : index
    %c0_21 = arith.constant 0 : index
    %56 = vector.load %arg2[%c4, %c0_21] : memref<9x512xf32, #tpu.memory_space<vmem>>, vector<1x512xf32>
    %57 = vector.broadcast %56 : vector<1x512xf32> to vector<4x512xf32>
    %58 = arith.mulf %39, %57 : vector<4x512xf32>
    %c511_i32 = arith.constant 511 : i32
    %59 = tpu.dynamic_rotate %39 by %c511_i32 dim 1 : vector<4x512xf32>, i32 -> vector<4x512xf32>
    %c5 = arith.constant 5 : index
    %c0_22 = arith.constant 0 : index
    %60 = vector.load %arg2[%c5, %c0_22] : memref<9x512xf32, #tpu.memory_space<vmem>>, vector<1x512xf32>
    %61 = vector.broadcast %60 : vector<1x512xf32> to vector<4x512xf32>
    %62 = arith.mulf %59, %61 : vector<4x512xf32>
    %c497_i32 = arith.constant 497 : i32
    %63 = tpu.dynamic_rotate %39 by %c497_i32 dim 1 : vector<4x512xf32>, i32 -> vector<4x512xf32>
    %c6 = arith.constant 6 : index
    %c0_23 = arith.constant 0 : index
    %64 = vector.load %arg2[%c6, %c0_23] : memref<9x512xf32, #tpu.memory_space<vmem>>, vector<1x512xf32>
    %65 = vector.broadcast %64 : vector<1x512xf32> to vector<4x512xf32>
    %66 = arith.mulf %63, %65 : vector<4x512xf32>
    %c496_i32 = arith.constant 496 : i32
    %67 = tpu.dynamic_rotate %39 by %c496_i32 dim 1 : vector<4x512xf32>, i32 -> vector<4x512xf32>
    %c7 = arith.constant 7 : index
    %c0_24 = arith.constant 0 : index
    %68 = vector.load %arg2[%c7, %c0_24] : memref<9x512xf32, #tpu.memory_space<vmem>>, vector<1x512xf32>
    %69 = vector.broadcast %68 : vector<1x512xf32> to vector<4x512xf32>
    %70 = arith.mulf %67, %69 : vector<4x512xf32>
    %c495_i32 = arith.constant 495 : i32
    %71 = tpu.dynamic_rotate %39 by %c495_i32 dim 1 : vector<4x512xf32>, i32 -> vector<4x512xf32>
    %c8 = arith.constant 8 : index
    %c0_25 = arith.constant 0 : index
    %72 = vector.load %arg2[%c8, %c0_25] : memref<9x512xf32, #tpu.memory_space<vmem>>, vector<1x512xf32>
    %73 = vector.broadcast %72 : vector<1x512xf32> to vector<4x512xf32>
    %74 = arith.mulf %71, %73 : vector<4x512xf32>
    %75 = tpu.concatenate %43, %47, %51, %55, %58, %62, %66, %70, %74 in 0 : vector<4x512xf32>, vector<4x512xf32>, vector<4x512xf32>, vector<4x512xf32>, vector<4x512xf32>, vector<4x512xf32>, vector<4x512xf32>, vector<4x512xf32>, vector<4x512xf32> -> vector<36x512xf32>
    %76 = arith.truncf %75 : vector<36x512xf32> to vector<36x512xbf16>
    %cst_26 = arith.constant dense<0.000000e+00> : vector<4x512xf32>
    %77 = tpu.matmul %5, %76, %cst_26 {dimension_numbers = #tpu.dot_dimension_numbers<[1], [0], [0], [1], [0, 0, 1, 1], [], []>} : vector<4x36xbf16>, vector<36x512xbf16>, vector<4x512xf32> -> vector<4x512xf32>
    %78 = arith.mulf %77, %77 : vector<4x512xf32>
    %79 = tpu.concatenate %77, %78 in 0 : vector<4x512xf32>, vector<4x512xf32> -> vector<8x512xf32>
    %cst_27 = arith.constant dense<0.000000e+00> : vector<8xf32>
    %80 = vector.multi_reduction <add>, %79, %cst_27 [1] : vector<8x512xf32> to vector<8xf32>
    %81 = vector.shape_cast %80 : vector<8xf32> to vector<8x1xf32>
    %cst_28 = arith.constant 0.001953125 : f32
    %82 = vector.broadcast %cst_28 : f32 to vector<8x1xf32>
    %83 = arith.mulf %81, %82 : vector<8x1xf32>
    %84 = vector.extract_strided_slice %83 {offsets = [0, 0], sizes = [4, 1], strides = [1, 1]} : vector<8x1xf32> to vector<4x1xf32>
    %85 = vector.extract_strided_slice %83 {offsets = [4, 0], sizes = [4, 1], strides = [1, 1]} : vector<8x1xf32> to vector<4x1xf32>
    %86 = arith.mulf %84, %84 : vector<4x1xf32>
    %87 = arith.subf %85, %86 : vector<4x1xf32>
    %cst_29 = arith.constant 0.000000e+00 : f32
    %88 = vector.broadcast %cst_29 : f32 to vector<4x1xf32>
    %89 = arith.maximumf %87, %88 : vector<4x1xf32>
    %90 = vector.broadcast %84 : vector<4x1xf32> to vector<4x512xf32>
    %91 = arith.subf %77, %90 : vector<4x512xf32>
    %cst_30 = arith.constant 9.99999974E-6 : f32
    %92 = vector.broadcast %cst_30 : f32 to vector<4x1xf32>
    %93 = arith.addf %89, %92 : vector<4x1xf32>
    %94 = math.rsqrt %93 : vector<4x1xf32>
    %95 = vector.broadcast %94 : vector<4x1xf32> to vector<4x512xf32>
    %96 = arith.mulf %91, %95 : vector<4x512xf32>
    %97 = vector.broadcast %10 : vector<4x1xf32> to vector<4x512xf32>
    %98 = arith.mulf %96, %97 : vector<4x512xf32>
    %99 = vector.broadcast %11 : vector<4x1xf32> to vector<4x512xf32>
    %100 = arith.addf %98, %99 : vector<4x512xf32>
    %cst_31 = arith.constant 0.000000e+00 : f32
    %101 = vector.broadcast %cst_31 : f32 to vector<4x512xf32>
    %102 = arith.maximumf %100, %101 : vector<4x512xf32>
    %103 = arith.truncf %102 : vector<4x512xf32> to vector<4x512xbf16>
    %cst_32 = arith.constant dense<0.000000e+00> : vector<16x512xf32>
    %104 = tpu.matmul %7, %103, %cst_32 {dimension_numbers = #tpu.dot_dimension_numbers<[1], [0], [0], [1], [0, 0, 1, 1], [], []>} : vector<16x4xbf16>, vector<4x512xbf16>, vector<16x512xf32> -> vector<16x512xf32>
    %105 = arith.mulf %104, %104 : vector<16x512xf32>
    %106 = tpu.concatenate %104, %105 in 0 : vector<16x512xf32>, vector<16x512xf32> -> vector<32x512xf32>
    %cst_33 = arith.constant dense<0.000000e+00> : vector<32xf32>
    %107 = vector.multi_reduction <add>, %106, %cst_33 [1] : vector<32x512xf32> to vector<32xf32>
    %108 = vector.shape_cast %107 : vector<32xf32> to vector<32x1xf32>
    %cst_34 = arith.constant 0.001953125 : f32
    %109 = vector.broadcast %cst_34 : f32 to vector<32x1xf32>
    %110 = arith.mulf %108, %109 : vector<32x1xf32>
    %111 = vector.extract_strided_slice %110 {offsets = [0, 0], sizes = [16, 1], strides = [1, 1]} : vector<32x1xf32> to vector<16x1xf32>
    %112 = vector.extract_strided_slice %110 {offsets = [16, 0], sizes = [16, 1], strides = [1, 1]} : vector<32x1xf32> to vector<16x1xf32>
    %113 = arith.mulf %111, %111 : vector<16x1xf32>
    %114 = arith.subf %112, %113 : vector<16x1xf32>
    %cst_35 = arith.constant 0.000000e+00 : f32
    %115 = vector.broadcast %cst_35 : f32 to vector<16x1xf32>
    %116 = arith.maximumf %114, %115 : vector<16x1xf32>
    %117 = vector.broadcast %111 : vector<16x1xf32> to vector<16x512xf32>
    %118 = arith.subf %104, %117 : vector<16x512xf32>
    %cst_36 = arith.constant 9.99999974E-6 : f32
    %119 = vector.broadcast %cst_36 : f32 to vector<16x1xf32>
    %120 = arith.addf %116, %119 : vector<16x1xf32>
    %121 = math.rsqrt %120 : vector<16x1xf32>
    %122 = vector.broadcast %121 : vector<16x1xf32> to vector<16x512xf32>
    %123 = arith.mulf %118, %122 : vector<16x512xf32>
    %124 = vector.broadcast %12 : vector<16x1xf32> to vector<16x512xf32>
    %125 = arith.mulf %123, %124 : vector<16x512xf32>
    %126 = vector.broadcast %13 : vector<16x1xf32> to vector<16x512xf32>
    %127 = arith.addf %125, %126 : vector<16x512xf32>
    %128 = arith.addf %127, %0 : vector<16x512xf32>
    %cst_37 = arith.constant 0.000000e+00 : f32
    %129 = vector.broadcast %cst_37 : f32 to vector<16x512xf32>
    %130 = arith.maximumf %128, %129 : vector<16x512xf32>
    %c0_38 = arith.constant 0 : index
    %c0_39 = arith.constant 0 : index
    %131 = vector.load %arg3[%c0_38, %c0_39] : memref<16x512xf32, #tpu.memory_space<vmem>>, vector<16x512xf32>
    tpu.vector_store %arg3[%c0_38, %c0_39], %130 {strides = array<i32>} : memref<16x512xf32, #tpu.memory_space<vmem>>, vector<16x512xf32>,
    return
  }
}

</mosaic_0001>

<bundles_post_ra>
// kernel: alpha_bottleneck.1
= control target key start
LH: loop header
LB: loop body
LE: loop exit
PB: predicated region body
PF: predicated region fallthrough
CT: control target
= control target key end

     0   :  { %vm32_vm0 = vcmask 130048   ;;  %vm104_vm1 = vcmask 1043456   ;;  %v910_v37 = vmov 56   ;;  %v911_v38 = vmov 0   ;;  %s913_s30 = smov 127   ;;  %s914_s4 = smov 111   ;;  %s1426_s0 = inlined_call_operand.vmem [shape: f32[16,512], index: 0, kind: input, shape index: {}, may-alias: {0,3}]   ;;  %s1427_s1 = inlined_call_operand.vmem [shape: f32[16,62], index: 1, kind: input, shape index: {}]   ;;  %s1428_s2 = inlined_call_operand.vmem [shape: f32[9,512], index: 2, kind: input, shape index: {}]   ;;  %s1429_s3 = inlined_call_operand.vmem [shape: f32[16,512], index: 3, kind: output, shape index: {}, may-alias: {0,3}]  }
   0x1   :  { %v15_v0 = vld [vmem:[%s1426_s0] sm:$0xff]  ;;  %v16_v2 = vld [vmem:[%s1426_s0 + $0x8] sm:$0xff]  ;;  %v17_v5 = vld [vmem:[%s1426_s0 + $0x10] sm:$0xff]  ;;  %885 = vset.pattern.permute.xlu1 %v910_v37  ;;  %887 = vset.pattern.permute.xlu0 %v911_v38  ;;  %v912_v40 = vmov 57   ;;  %s915_s5 = smov 112   ;;  %s916_s6 = smov 16  }
   0x2   :  { %v19_v1 = vld [vmem:[%s1426_s0 + $0x20] sm:$0xff]  ;;  %v20_v4 = vld [vmem:[%s1426_s0 + $0x28] sm:$0xff]  ;;  %v21_v6 = vld [vmem:[%s1426_s0 + $0x30] sm:$0xff]  ;;  %s917_s7 = smov 113   ;;  %s918_s8 = smov 17   ;;  %vm490_vm6 = vcmask 1041408  }
   0x3   :  { %v23_v3 = vpack.c.bf16 %v19_v1, %v15_v0  ;;  %v24_v7 = vpack.c.bf16 %v20_v4, %v16_v2  ;;  %v25_v8 = vpack.c.bf16 %v21_v6, %v17_v5  ;;  %v18_v9 = vld [vmem:[%s1426_s0 + $0x18] sm:$0xff]  ;;  %v973_v11 = vld [vmem:[%s1427_s1] sm:$0xf]  ;;  %s919_s9 = smov 15   ;;  %s920_s10 = smov 1   ;;  %vm486_vm14 = vcmask 293888  }
   0x4   :  { %v22_v10 = vld [vmem:[%s1426_s0 + $0x38] sm:$0xff]  ;;  %v977_v13 = vpack.c.bf16 %v973_v11, %v973_v11  ;;  %148 = vperm.xlu1 %885, %v973_v11  }
   0x5   :  { %43 = vmatpush.bf16.msra.mxu0 %v23_v3  ;;  %v26_v12 = vpack.c.bf16 %v22_v10, %v18_v9  ;;  %56 = vmatpush.bf16.msra.mxu1 %v24_v7  ;;  %v1088_v38 = vld [vmem:[%s1428_s2 + $0x7] ss:$8 sm:$0xf] }
   0x6   :  { %69 = vmatpush.bf16.msra.mxu2 %v25_v8 }
   0x7   :  { %82 = vmatpush.bf16.msra.mxu3 %v26_v12 }
   0x8   :  { %849 = vmatmul.msk.bf16.vlgmr.msra.gmra.mxu0 %vm32_vm0, %v977_v13  ;;  %850 = vmatmul.msk.bf16.vlgmr.msra.gmra.mxu1 %vm32_vm0, %v977_v13 }
   0x9   :  { %851 = vmatmul.msk.bf16.vlgmr.msra.gmra.mxu2 %vm32_vm0, %v977_v13 }
   0xa   :  { %852 = vmatmul.msk.bf16.vlgmr.msra.gmra.mxu3 %vm32_vm0, %v977_v13 }
   0xc   :  { %886 = vset.pattern.permute.xlu1 %v912_v40 }
   0xd   :  { %156 = vperm.xlu1 %886, %v973_v11  }
  0x76   :  { %v149_v54 = vpop.permute.xlu1 %148 }
  0x7f   :  { %v157_v62 = vpop.permute.xlu1 %156 }
  0x85   :  { %v45_v14 = vpop.f32.mrf.mxu0  ;;  %v983_v16 = vpop.f32.mrf.mxu1 }
  0x86   :  { %v88_v15 = vmul.f32 %v45_v14, %v45_v14  ;;  %v89_v17 = vmul.f32 %v983_v16, %v983_v16 }
  0x88   :  { %v96_v18 = vrot.slane %v88_v15, 4  ;;  %v97_v19 = vrot.slane %v89_v17, 4 }
  0x8a   :  { %v105_v21 = vsel %vm104_vm1, %v45_v14, %v96_v18  ;;  %v106_v22 = vsel %vm104_vm1, %v983_v16, %v97_v19  ;;  %v1051_v19 = vld [vmem:[%s1428_s2 + $0x20] ss:$8 sm:$0xf] }
  0x8b   :  { %v109_v30 = vadd.f32 %v106_v22, %v105_v21 }
  0x8c   :  { %v71_v20 = vpop.f32.mrf.mxu2 }
  0x8d   :  { %v90_v23 = vmul.f32 %v71_v20, %v71_v20  ;;  %v84_v24 = vpop.f32.mrf.mxu3  ;;  %v47_v25 = vpop.f32.mrf.mxu0 }
  0x8e   :  { %v91_v26 = vmul.f32 %v84_v24, %v84_v24  ;;  %v60_v27 = vpop.f32.mrf.mxu1 }
  0x8f   :  { %v98_v28 = vrot.slane %v90_v23, 4 }
  0x90   :  { %v99_v29 = vrot.slane %v91_v26, 4 }
  0x91   :  { %v107_v31 = vsel %vm104_vm1, %v71_v20, %v98_v28 }
  0x92   :  { %v110_v32 = vadd.f32 %v109_v30, %v107_v31  ;;  %v108_v33 = vsel %vm104_vm1, %v84_v24, %v99_v29 }
  0x94   :  { %v73_v34 = vpop.f32.mrf.mxu2  ;;  %v111_v35 = vadd.f32 %v110_v32, %v108_v33  ;;  %v1075_v32 = vld [vmem:[%s1428_s2 + $0x5] ss:$8 sm:$0xf]  ;;  %v398_v33 = vperm.slane %v1051_v19, 3 }
  0x95   :  { %v86_v36 = vpop.f32.mrf.mxu3  ;;  %v313_v34 = vperm.slane %v1075_v32, 2 }
  0x96   :  { %112 = vadd.xlane.f32.xlu0 %v111_v35 }
 0x109   :  { %v113_v39 = vpop.xlane.xlu0 %112 }
 0x10a   :  { %v114_v41 = vmul.f32 0.001953125, %v113_v39 }
 0x10c   :  { %v115_v42 = vmul.f32 %v114_v41, %v114_v41  ;;  %v121_v56 = vsub.f32 %v45_v14, %v114_v41  ;;  %v123_v57 = vsub.f32 %v71_v20, %v114_v41  ;;  %v124_v59 = vsub.f32 %v84_v24, %v114_v41 }
 0x10d   :  { %v122_v7 = vsub.f32 %v983_v16, %v114_v41  ;;  %v175_v16 = vlaneseq  ;;  %v397_v20 = vperm.slane %v1051_v19, 2 }
 0x10e   :  { %v117_v43 = vrot.slane %v115_v42, 4 }
 0x10f   :  { %v1046_v18 = vand.u32 127, %v175_v16 }
 0x110   :  { %v119_v44 = vsub.f32 %v114_v41, %v117_v43  ;;  %v369_v41 = vperm.slane %v1088_v38, 2  ;;  %v1097_v43 = vld [vmem:[%s1428_s2 + $0x4] ss:$8 sm:$0xf] }
 0x111   :  { %vm387_vm5 = vcmp.lt.s32.totalorder %v1046_v18, 111  ;;  %vm303_vm7 = vcmp.lt.s32.totalorder %v1046_v18, 127  ;;  %vm359_vm8 = vcmp.lt.s32.totalorder %v1046_v18, 112  ;;  %vm331_vm9 = vcmp.lt.s32.totalorder %v1046_v18, 113 }
 0x112   :  { %v120_v45 = vmax.f32 %v119_v44, 0.0  ;;  %vm204_vm10 = vcmp.lt.s32.totalorder %v1046_v18, 16  ;;  %vm260_vm11 = vcmp.lt.s32.totalorder %v1046_v18, 1  ;;  %vm177_vm12 = vcmp.lt.s32.totalorder %v1046_v18, 17 }
 0x113   :  { %vm232_vm13 = vcmp.lt.s32.totalorder %v1046_v18, 15 }
 0x114   :  { %v125_v46 = vadd.f32 1e-05, %v120_v45  ;;  %v1106_v45 = vld [vmem:[%s1428_s2 + $0x6] ss:$8 sm:$0xf] }
 0x116   :  { %894 = vrsqrt.f32 %v125_v46  ;;  %vm132_vm3 = vweird.f32 %v125_v46 }
 0x11c   :  { %v895_v47 = vpop.eup %894 }
 0x11d   :  { %v127_v48 = vmul.f32 %v895_v47, %v125_v46  ;;  %vm133_vm2 = vweird.f32 %v895_v47 }
 0x11e   :  { %vm134_vm4 = vmor %vm132_vm3, %vm133_vm2  ;;  %vm639_vm2 = vcmask 31744  }
 0x11f   :  { %v128_v49 = vmul.f32 %v895_v47, %v127_v48  ;;  %v285_v48 = vperm.slane %v1097_v43, 2 }
 0x121   :  { %v129_v50 = vmul.f32 0.5, %v128_v49 }
 0x123   :  { %v130_v51 = vsub.f32 1.5, %v129_v50 }
 0x125   :  { %v131_v52 = vmul.f32 %v895_v47, %v130_v51  ;;  %v341_v51 = vperm.slane %v1106_v45, 2 }
 0x127   :  { %v135_v53 = vsel %vm134_vm4, %v895_v47, %v131_v52 }
 0x128   :  { %138 = vperm.xlu0 %887, %v135_v53  }
 0x19a   :  { %v139_v55 = vpop.permute.xlu0 %138 }
 0x19b   :  { %v140_v58 = vrot.slane %v139_v55, 4 }
 0x19d   :  { %v142_v60 = vmul.f32 %v140_v58, %v121_v56  ;;  %v144_v61 = vmul.f32 %v140_v58, %v123_v57  ;;  %v145_v63 = vmul.f32 %v140_v58, %v124_v59  ;;  %v143_v9 = vmul.f32 %v140_v58, %v122_v7 }
 0x19e   :  { %v312_v7 = vperm.slane %v1075_v32, 1 }
 0x19f   :  { %v151_v0 = vmul.f32 %v149_v54, %v142_v60  ;;  %v153_v1 = vmul.f32 %v149_v54, %v144_v61  ;;  %v154_v4 = vmul.f32 %v149_v54, %v145_v63  ;;  %v152_v12 = vmul.f32 %v149_v54, %v143_v9 }
 0x1a0   :  { %v395_v63 = vperm.slane %v1051_v19, 0 }
 0x1a1   :  { %v159_v2 = vadd.f32 %v157_v62, %v151_v0  ;;  %v161_v3 = vadd.f32 %v157_v62, %v153_v1  ;;  %v162_v8 = vadd.f32 %v157_v62, %v154_v4  ;;  %v160_v14 = vadd.f32 %v157_v62, %v152_v12 }
 0x1a2   :  { %v396_v0 = vperm.slane %v1051_v19, 1 }
 0x1a3   :  { %v994_v5 = vmax.f32 %v159_v2, 0.0  ;;  %v996_v6 = vmax.f32 %v161_v3, 0.0  ;;  %v1003_v10 = vmax.f32 %v162_v8, 0.0  ;;  %v1010_v15 = vmax.f32 %v160_v14, 0.0 }
 0x1a5   :  { %299 = vrot.lane.b32.xlu1 %v996_v6, %s913_s30  ;;  %383 = vrot.lane.b32.xlu2 %v996_v6, %s914_s4  ;;  %v293_v59 = vmul.f32 %v285_v48, %v996_v6 }
 0x1a6   :  { %351 = vrot.lane.b32.xlu0 %v994_v5, %s915_s5 }
 0x1ad   :  { %355 = vrot.lane.b32.xlu1 %v996_v6, %s915_s5  ;;  %385 = vrot.lane.b32.xlu2 %v1003_v10, %s914_s4 }
 0x1ae   :  { %200 = vrot.lane.b32.xlu0 %v996_v6, %s916_s6 }
 0x1b5   :  { %301 = vrot.lane.b32.xlu2 %v1003_v10, %s913_s30  ;;  %379 = vrot.lane.b32.xlu1 %v994_v5, %s914_s4 }
 0x1b6   :  { %297 = vrot.lane.b32.xlu0 %v1010_v15, %s913_s30 }
 0x1bd   :  { %357 = vrot.lane.b32.xlu2 %v1003_v10, %s915_s5  ;;  %327 = vrot.lane.b32.xlu1 %v996_v6, %s917_s7 }
 0x1be   :  { %169 = vrot.lane.b32.xlu0 %v1010_v15, %s918_s8 }
 0x1c5   :  { %295 = vrot.lane.b32.xlu2 %v994_v5, %s913_s30  ;;  %381 = vrot.lane.b32.xlu1 %v1010_v15, %s914_s4 }
 0x1c6   :  { %226 = vrot.lane.b32.xlu0 %v1010_v15, %s919_s9 }
 0x1cd   :  { %329 = vrot.lane.b32.xlu2 %v1003_v10, %s917_s7  ;;  %254 = vrot.lane.b32.xlu1 %v1010_v15, %s920_s10 }
 0x1ce   :  { %325 = vrot.lane.b32.xlu0 %v1010_v15, %s917_s7 }
 0x1d5   :  { %198 = vrot.lane.b32.xlu2 %v1010_v15, %s916_s6  ;;  %323 = vrot.lane.b32.xlu1 %v994_v5, %s917_s7 }
 0x1d6   :  { %230 = vrot.lane.b32.xlu0 %v1003_v10, %s919_s9 }
 0x1dd   :  { %256 = vrot.lane.b32.xlu2 %v996_v6, %s920_s10  ;;  %171 = vrot.lane.b32.xlu1 %v996_v6, %s918_s8 }
 0x1de   :  { %224 = vrot.lane.b32.xlu0 %v994_v5, %s919_s9 }
 0x1e5   :  { %353 = vrot.lane.b32.xlu2 %v1010_v15, %s915_s5  ;;  %228 = vrot.lane.b32.xlu1 %v996_v6, %s919_s9 }
 0x1ed   :  { %202 = vrot.lane.b32.xlu2 %v1003_v10, %s916_s6  ;;  %173 = vrot.lane.b32.xlu1 %v1003_v10, %s918_s8 }
 0x1f5   :  { %258 = vrot.lane.b32.xlu2 %v1003_v10, %s920_s10  ;;  %252 = vrot.lane.b32.xlu1 %v994_v5, %s920_s10 }
 0x1fd   :  { %196 = vrot.lane.b32.xlu2 %v994_v5, %s916_s6  ;;  %484 = vrot.lane.b32.xlu1 %v977_v13, %s915_s5  ;;  %s922_s5 = smov 76  }
 0x1ff   :  { %v1044_v17 = vpop.permute.xlu2 %383 }
 0x205   :  { %167 = vrot.lane.b32.xlu2 %v994_v5, %s918_s8 }
 0x207   :  { %v386_v21 = vpop.permute.xlu2 %385 }
 0x208   :  { %v388_v13 = vsel %vm387_vm5, %v1044_v17, %v386_v21 }
 0x209   :  { %v405_v22 = vmul.f32 %v397_v20, %v388_v13  ;;  %v368_v13 = vperm.slane %v1088_v38, 1 }
 0x20b   :  { %v481_v23 = vpack.c.bf16 %v405_v22, %v405_v22  ;;  %v370_v22 = vperm.slane %v1088_v38, 3 }
 0x20d   :  { %v498_v24 = vsel %vm490_vm6, %v481_v23, 0  ;;  %v314_v23 = vperm.slane %v1075_v32, 3 }
 0x20e   :  { %534 = vmatpush.bf16.msrb.mxu2 %v498_v24  ;;  %v311_v24 = vperm.slane %v1075_v32, 0 }
 0x20f   :  { %v1060_v25 = vpop.permute.xlu2 %301 }
 0x217   :  { %v300_v26 = vpop.permute.xlu1 %299  ;;  %v1062_v27 = vpop.permute.xlu2 %357 }
 0x218   :  { %v1064_v28 = vpop.permute.xlu0 %351  ;;  %v304_v37 = vsel %vm303_vm7, %v300_v26, %v1060_v25 }
 0x219   :  { %v321_v46 = vmul.f32 %v313_v34, %v304_v37 }
 0x21b   :  { %v437_v52 = vrot.slane %v321_v46, 4 }
 0x21d   :  { %v465_v60 = vsel %vm104_vm1, %v293_v59, %v437_v52  ;;  %v286_v52 = vperm.slane %v1097_v43, 3 }
 0x21f   :  { %v1066_v29 = vpop.permute.xlu1 %355  ;;  %v1068_v30 = vpop.permute.xlu2 %295 }
 0x220   :  { %v1070_v31 = vpop.permute.xlu0 %200  ;;  %v360_v44 = vsel %vm359_vm8, %v1066_v29, %v1062_v27  ;;  %v307_v37 = vsel %vm303_vm7, %v1060_v25, %v1068_v30 }
 0x221   :  { %v377_v49 = vmul.f32 %v369_v41, %v360_v44  ;;  %v322_v48 = vmul.f32 %v314_v23, %v307_v37  ;;  %v1220_v23 = vld [vmem:[%s1428_s2 + $0x2] ss:$8 sm:$0xf] }
 0x223   :  { %v449_v57 = vrot.slane %v377_v49, 4 }
 0x227   :  { %v1080_v35 = vpop.permute.xlu2 %329  ;;  %v380_v36 = vpop.permute.xlu1 %379 }
 0x228   :  { %v298_v39 = vpop.permute.xlu0 %297  ;;  %v391_v40 = vsel %vm387_vm5, %v386_v21, %v380_v36 }
 0x229   :  { %v406_v42 = vmul.f32 %v398_v33, %v391_v40  ;;  %v305_v12 = vsel %vm303_vm7, %v298_v39, %v300_v26  ;;  %v340_v26 = vperm.slane %v1106_v45, 1  ;;  %v306_v40 = vsel %vm303_vm7, %v1068_v30, %v298_v39 }
 0x22a   :  { %v320_v19 = vmul.f32 %v312_v7, %v305_v12  ;;  %v319_v30 = vmul.f32 %v311_v24, %v306_v40 }
 0x22b   :  { %v482_v47 = vpack.c.bf16 %v406_v42, %v406_v42 }
 0x22c   :  { %v436_v42 = vrot.slane %v320_v19, 4  ;;  %v1203_v19 = vld [vmem:[%s1428_s2] ss:$8 sm:$0xf] }
 0x22d   :  { %v501_v50 = vsel %vm490_vm6, %v482_v47, 0 }
 0x22e   :  { %547 = vmatpush.bf16.msrb.mxu3 %v501_v50 }
 0x22f   :  { %v1112_v53 = vpop.permute.xlu2 %198  ;;  %v328_v54 = vpop.permute.xlu1 %327 }
 0x230   :  { %v1114_v55 = vpop.permute.xlu0 %169  ;;  %v332_v56 = vsel %vm331_vm9, %v328_v54, %v1080_v35 }
 0x231   :  { %v349_v58 = vmul.f32 %v341_v51, %v332_v56  ;;  %v283_v51 = vperm.slane %v1097_v43, 0 }
 0x233   :  { %v469_v61 = vsel %vm104_vm1, %v349_v58, %v449_v57  ;;  %v435_v58 = vrot.slane %v319_v30, 4 }
 0x234   :  { %v477_v62 = vpack.c.bf16 %v469_v61, %v465_v60 }
 0x236   :  { %535 = vmatpush.bf16.msrb.mxu2 %v477_v62  ;;  %v294_v62 = vmul.f32 %v286_v52, %v1003_v10  ;;  %v1194_v10 = vld [vmem:[%s1428_s2 + $0x3] ss:$8 sm:$0xf] }
 0x237   :  { %v1124_v1 = vpop.permute.xlu2 %256  ;;  %v382_v2 = vpop.permute.xlu1 %381 }
 0x238   :  { %v1126_v3 = vpop.permute.xlu0 %226  ;;  %v389_v4 = vsel %vm387_vm5, %v382_v2, %v1044_v17  ;;  %v390_v6 = vsel %vm387_vm5, %v380_v36, %v382_v2  ;;  %v284_v17 = vperm.slane %v1097_v43, 1  ;;  %v363_v36 = vsel %vm359_vm8, %v1062_v27, %v1064_v28 }
 0x239   :  { %v403_v8 = vmul.f32 %v395_v63, %v390_v6  ;;  %v404_v9 = vmul.f32 %v396_v0, %v389_v4  ;;  %v367_v27 = vperm.slane %v1088_v38, 0  ;;  %v378_v50 = vmul.f32 %v370_v22, %v363_v36 }
 0x23a   :  { %v292_v47 = vmul.f32 %v284_v17, %v1010_v15  ;;  %v342_v38 = vperm.slane %v1106_v45, 3  ;;  %v438_v15 = vrot.slane %v322_v48, 4  ;;  %v186_v22 = vperm.slane %v1203_v19, 2 }
 0x23b   :  { %v479_v14 = vpack.c.bf16 %v403_v8, %v403_v8  ;;  %v480_v16 = vpack.c.bf16 %v404_v9, %v404_v9  ;;  %v450_v63 = vrot.slane %v378_v50, 4  ;;  %v242_v36 = vperm.slane %v1220_v23, 2 }
 0x23c   :  { %v464_v56 = vsel %vm104_vm1, %v292_v47, %v436_v42  ;;  %v466_v8 = vsel %vm104_vm1, %v294_v62, %v438_v15 }
 0x23d   :  { %v492_v20 = vsel %vm490_vm6, %v479_v14, 0  ;;  %v495_v21 = vsel %vm490_vm6, %v480_v16, 0 }
 0x23e   :  { %508 = vmatpush.bf16.msrb.mxu0 %v492_v20  ;;  %521 = vmatpush.bf16.msrb.mxu1 %v495_v21  ;;  %v270_v21 = vperm.slane %v1194_v10, 2 }
 0x23f   :  { %v354_v33 = vpop.permute.xlu2 %353  ;;  %v1144_v34 = vpop.permute.xlu1 %254 }
 0x240   :  { %v326_v32 = vpop.permute.xlu0 %325  ;;  %v361_v41 = vsel %vm359_vm8, %v354_v33, %v1066_v29  ;;  %v362_v25 = vsel %vm359_vm8, %v1064_v28, %v354_v33  ;;  %v339_v29 = vperm.slane %v1106_v45, 0  ;;  %v291_v45 = vmul.f32 %v283_v51, %v994_v5  ;;  %v1189_v5 = vld [vmem:[%s1428_s2 + $0x1] ss:$8 sm:$0xf] }
 0x241   :  { %v333_v44 = vsel %vm331_vm9, %v326_v32, %v328_v54  ;;  %v376_v46 = vmul.f32 %v368_v13, %v361_v41  ;;  %v375_v54 = vmul.f32 %v367_v27, %v362_v25  ;;  %v214_v20 = vperm.slane %v1189_v5, 2 }
 0x242   :  { %v348_v39 = vmul.f32 %v340_v26, %v333_v44  ;;  %v463_v6 = vsel %vm104_vm1, %v291_v45, %v435_v58  ;;  %v206_v13 = vsel %vm204_vm10, %v1112_v53, %v1070_v31  ;;  %v262_v17 = vsel %vm260_vm11, %v1144_v34, %v1124_v1 }
 0x243   :  { %v448_v49 = vrot.slane %v376_v46, 4  ;;  %v447_v0 = vrot.slane %v375_v54, 4  ;;  %v222_v26 = vmul.f32 %v214_v20, %v206_v13  ;;  %v278_v33 = vmul.f32 %v270_v21, %v262_v17 }
 0x244   :  { %v271_v27 = vperm.slane %v1194_v10, 3  ;;  %v212_v58 = vperm.slane %v1189_v5, 0 }
 0x245   :  { %v468_v28 = vsel %vm104_vm1, %v348_v39, %v448_v49  ;;  %v413_v42 = vrot.slane %v222_v26, 4  ;;  %v425_v44 = vrot.slane %v278_v33, 4  ;;  %v243_v39 = vperm.slane %v1220_v23, 3 }
 0x246   :  { %v476_v57 = vpack.c.bf16 %v468_v28, %v464_v56 }
 0x247   :  { %v1173_v59 = vpop.permute.xlu2 %202  ;;  %v324_v60 = vpop.permute.xlu1 %323 }
 0x248   :  { %v334_v61 = vsel %vm331_vm9, %v324_v60, %v326_v32  ;;  %v335_v43 = vsel %vm331_vm9, %v1080_v35, %v324_v60  ;;  %522 = vmatpush.bf16.msrb.mxu1 %v476_v57  ;;  %v215_v32 = vperm.slane %v1189_v5, 3  ;;  %v231_v47 = vpop.permute.xlu0 %230  ;;  %v205_v48 = vsel %vm204_vm10, %v1070_v31, %v1173_v59 }
 0x249   :  { %v347_v2 = vmul.f32 %v339_v29, %v334_v61  ;;  %v350_v4 = vmul.f32 %v342_v38, %v335_v43  ;;  %v187_v38 = vperm.slane %v1203_v19, 3  ;;  %v213_v60 = vperm.slane %v1189_v5, 1 }
 0x24a   :  { %v223_v52 = vmul.f32 %v215_v32, %v205_v48 }
 0x24b   :  { %v467_v7 = vsel %vm104_vm1, %v347_v2, %v447_v0  ;;  %v470_v9 = vsel %vm104_vm1, %v350_v4, %v450_v63  ;;  %v185_v4 = vperm.slane %v1203_v19, 1 }
 0x24c   :  { %v475_v12 = vpack.c.bf16 %v467_v7, %v463_v6  ;;  %v478_v14 = vpack.c.bf16 %v470_v9, %v466_v8  ;;  %v414_v28 = vrot.slane %v223_v52, 4  ;;  %v184_v6 = vperm.slane %v1203_v19, 0 }
 0x24d   :  { %v268_v7 = vperm.slane %v1194_v10, 0  ;;  %v269_v8 = vperm.slane %v1194_v10, 1  ;;  %v240_v9 = vperm.slane %v1220_v23, 0 }
 0x24e   :  { %509 = vmatpush.bf16.msrb.mxu0 %v475_v12  ;;  %548 = vmatpush.bf16.msrb.mxu3 %v478_v14  ;;  %v241_v12 = vperm.slane %v1220_v23, 1 }
 0x24f   :  { %v1198_v35 = vpop.permute.xlu2 %258  ;;  %v172_v16 = vpop.permute.xlu1 %171 }
 0x250   :  { %v179_v24 = vsel %vm177_vm12, %v1114_v55, %v172_v16  ;;  %v261_v30 = vsel %vm260_vm11, %v1124_v1, %v1198_v35  ;;  %v225_v62 = vpop.permute.xlu0 %224 }
 0x251   :  { %v194_v37 = vmul.f32 %v186_v22, %v179_v24  ;;  %v279_v54 = vmul.f32 %v271_v27, %v261_v30  ;;  %v235_v14 = vsel %vm232_vm13, %v225_v62, %v1126_v3  ;;  %v236_v5 = vsel %vm232_vm13, %v231_v47, %v225_v62 }
 0x252   :  { %v248_v23 = vmul.f32 %v240_v9, %v236_v5 }
 0x253   :  { %v457_v49 = vsel %vm104_vm1, %v194_v37, %v413_v42  ;;  %v426_v57 = vrot.slane %v279_v54, 4 }
 0x257   :  { %v229_v40 = vpop.permute.xlu1 %228  ;;  %v197_v46 = vpop.permute.xlu2 %196 }
 0x258   :  { %v234_v41 = vsel %vm232_vm13, %v1126_v3, %v229_v40  ;;  %v233_v29 = vsel %vm232_vm13, %v229_v40, %v231_v47  ;;  %v207_v63 = vsel %vm204_vm10, %v197_v46, %v1112_v53  ;;  %v208_v0 = vsel %vm204_vm10, %v1173_v59, %v197_v46 }
 0x259   :  { %v250_v25 = vmul.f32 %v242_v36, %v234_v41  ;;  %v251_v31 = vmul.f32 %v243_v39, %v233_v29  ;;  %v220_v10 = vmul.f32 %v212_v58, %v208_v0  ;;  %v249_v3 = vmul.f32 %v241_v12, %v235_v14  ;;  %v1302_v0 = vld [vmem:[%s1427_s1] sm:$0xff] }
 0x25b   :  { %v461_v50 = vsel %vm104_vm1, %v250_v25, %v425_v44  ;;  %v462_v45 = vsel %vm104_vm1, %v251_v31, %v426_v57  ;;  %v411_v24 = vrot.slane %v220_v10, 4  ;;  %v923_v10 = vmov 59  }
 0x25c   :  { %v473_v51 = vpack.c.bf16 %v461_v50, %v457_v49 }
 0x25e   :  { %536 = vmatpush.bf16.msrb.mxu2 %v473_v51 }
 0x25f   :  { %v174_v56 = vpop.permute.xlu1 %173  ;;  %v168_v61 = vpop.permute.xlu2 %167 }
 0x260   :  { %v178_v1 = vsel %vm177_vm12, %v172_v16, %v174_v56  ;;  %v180_v53 = vsel %vm177_vm12, %v168_v61, %v1114_v55  ;;  %v181_v59 = vsel %vm177_vm12, %v174_v56, %v168_v61  ;;  %v221_v16 = vmul.f32 %v213_v60, %v207_v63 }
 0x261   :  { %v195_v15 = vmul.f32 %v187_v38, %v178_v1  ;;  %v193_v21 = vmul.f32 %v185_v4, %v180_v53  ;;  %v192_v13 = vmul.f32 %v184_v6, %v181_v59  ;;  %v921_v61 = vmov 58  }
 0x262   :  { %v412_v26 = vrot.slane %v221_v16, 4  ;;  %888 = vset.pattern.permute.xlu1 %v921_v61  ;;  %v924_v16 = vmov 60  }
 0x263   :  { %v458_v43 = vsel %vm104_vm1, %v195_v15, %v414_v28  ;;  %v455_v37 = vsel %vm104_vm1, %v192_v13, %v411_v24  ;;  %613 = vperm.xlu1 %888, %v973_v11   ;;  %890 = vset.pattern.permute.xlu2 %v924_v16 }
 0x264   :  { %v474_v2 = vpack.c.bf16 %v462_v45, %v458_v43 }
 0x266   :  { %549 = vmatpush.bf16.msrb.mxu3 %v474_v2  ;;  %v1307_v2 = vld [vmem:[%s1427_s1 + $0x8] sm:$0xff] }
 0x267   :  { %v253_v19 = vpop.permute.xlu1 %252  ;;  %v31_v6 = vpack.c.bf16 %v1307_v2, %v1302_v0 }
 0x268   :  { %v263_v20 = vsel %vm260_vm11, %v253_v19, %v1144_v34  ;;  %v264_v55 = vsel %vm260_vm11, %v1198_v35, %v253_v19  ;;  %v456_v34 = vsel %vm104_vm1, %v193_v21, %v412_v26 }
 0x269   :  { %v276_v17 = vmul.f32 %v268_v7, %v264_v55  ;;  %v277_v22 = vmul.f32 %v269_v8, %v263_v20 }
 0x26b   :  { %v423_v33 = vrot.slane %v276_v17, 4  ;;  %v424_v36 = vrot.slane %v277_v22, 4  ;;  %637 = vrot.lane.b32.xlu1 %v31_v6, %s922_s5 }
 0x26c   :  { %891 = vset.pattern.permute.xlu1 %v924_v16 }
 0x26d   :  { %v459_v40 = vsel %vm104_vm1, %v248_v23, %v423_v33  ;;  %v460_v32 = vsel %vm104_vm1, %v249_v3, %v424_v36 }
 0x26e   :  { %v471_v18 = vpack.c.bf16 %v459_v40, %v455_v37  ;;  %v472_v35 = vpack.c.bf16 %v460_v32, %v456_v34 }
 0x26f   :  { %v485_v41 = vpop.permute.xlu1 %484 }
 0x270   :  { %510 = vmatpush.bf16.msrb.mxu0 %v471_v18  ;;  %523 = vmatpush.bf16.msrb.mxu1 %v472_v35 }
 0x271   :  { %863 = vmatmul.msk.bf16.vlgmr.msrb.gmra.mxu2 %vm486_vm14, %v485_v41  ;;  %864 = vmatmul.msk.bf16.vlgmr.msrb.gmra.mxu3 %vm486_vm14, %v485_v41 }
 0x273   :  { %861 = vmatmul.msk.bf16.vlgmr.msrb.gmra.mxu0 %vm486_vm14, %v485_v41  ;;  %862 = vmatmul.msk.bf16.vlgmr.msrb.gmra.mxu1 %vm486_vm14, %v485_v41 }
 0x2d5   :  { %v614_v26 = vpop.permute.xlu1 %613 }
 0x2f0   :  { %v1284_v42 = vpop.f32.mrf.mxu0  ;;  %v1286_v44 = vpop.f32.mrf.mxu1 }
 0x2f1   :  { %v555_v27 = vmul.f32 %v1284_v42, %v1284_v42  ;;  %v556_v46 = vmul.f32 %v1286_v44, %v1286_v44 }
 0x2f3   :  { %v563_v25 = vrot.slane %v555_v27, 4  ;;  %v564_v47 = vrot.slane %v556_v46, 4 }
 0x2f4   :  { %v538_v48 = vpop.f32.mrf.mxu2  ;;  %v551_v30 = vpop.f32.mrf.mxu3 }
 0x2f5   :  { %v571_v39 = vsel %vm104_vm1, %v1284_v42, %v563_v25  ;;  %v572_v49 = vsel %vm104_vm1, %v1286_v44, %v564_v47  ;;  %v557_v50 = vmul.f32 %v538_v48, %v538_v48  ;;  %v558_v29 = vmul.f32 %v551_v30, %v551_v30 }
 0x2f6   :  { %v575_v51 = vadd.f32 %v572_v49, %v571_v39 }
 0x2f7   :  { %v565_v52 = vrot.slane %v557_v50, 4  ;;  %v566_v54 = vrot.slane %v558_v29, 4  ;;  %v638_v29 = vpop.permute.xlu1 %637 }
 0x2f8   :  { %v514_v38 = vpop.f32.mrf.mxu0  ;;  %v527_v31 = vpop.f32.mrf.mxu1 }
 0x2f9   :  { %v573_v56 = vsel %vm104_vm1, %v538_v48, %v565_v52  ;;  %v574_v28 = vsel %vm104_vm1, %v551_v30, %v566_v54 }
 0x2fa   :  { %v576_v1 = vadd.f32 %v575_v51, %v573_v56  ;;  %v925_v51 = vmov 61  }
 0x2fc   :  { %v540_v57 = vpop.f32.mrf.mxu2  ;;  %v553_v15 = vpop.f32.mrf.mxu3  ;;  %v577_v58 = vadd.f32 %v576_v1, %v574_v28 }
 0x2fe   :  { %578 = vadd.xlane.f32.xlu2 %v577_v58 }
 0x316   :  { %789 = vperm.xlu2 %890, %v1302_v0  }
 0x31e   :  { %893 = vset.pattern.permute.xlu2 %v925_v51 }
 0x371   :  { %v579_v60 = vpop.xlane.xlu2 %578 }
 0x372   :  { %v580_v43 = vmul.f32 0.001953125, %v579_v60 }
 0x374   :  { %v581_v45 = vmul.f32 %v580_v43, %v580_v43  ;;  %v587_v55 = vsub.f32 %v1284_v42, %v580_v43  ;;  %v588_v21 = vsub.f32 %v1286_v44, %v580_v43  ;;  %v589_v13 = vsub.f32 %v538_v48, %v580_v43 }
 0x375   :  { %v590_v17 = vsub.f32 %v551_v30, %v580_v43 }
 0x376   :  { %v583_v62 = vrot.slane %v581_v45, 4 }
 0x378   :  { %v585_v63 = vsub.f32 %v580_v43, %v583_v62 }
 0x37a   :  { %v586_v4 = vmax.f32 %v585_v63, 0.0 }
 0x37c   :  { %v591_v7 = vadd.f32 1e-05, %v586_v4 }
 0x37e   :  { %896 = vrsqrt.f32 %v591_v7  ;;  %vm598_vm0 = vweird.f32 %v591_v7 }
 0x384   :  { %v897_v8 = vpop.eup %896 }
 0x385   :  { %v593_v9 = vmul.f32 %v897_v8, %v591_v7  ;;  %vm599_vm15 = vweird.f32 %v897_v8 }
 0x386   :  { %vm600_vm1 = vmor %vm598_vm0, %vm599_vm15 }
 0x387   :  { %v594_v12 = vmul.f32 %v897_v8, %v593_v9 }
 0x389   :  { %v595_v53 = vmul.f32 0.5, %v594_v12 }
 0x38b   :  { %v596_v59 = vsub.f32 1.5, %v595_v53 }
 0x38d   :  { %v597_v14 = vmul.f32 %v897_v8, %v596_v59 }
 0x38f   :  { %v601_v5 = vsel %vm600_vm1, %v897_v8, %v597_v14 }
 0x390   :  { %604 = vperm.xlu0 %887, %v601_v5  }
 0x398   :  { %889 = vset.pattern.permute.xlu0 %v923_v10 }
 0x399   :  { %621 = vperm.xlu0 %889, %v973_v11  }
 0x3a1   :  { %892 = vset.pattern.permute.xlu0 %v925_v51 }
 0x402   :  { %v605_v19 = vpop.permute.xlu0 %604 }
 0x403   :  { %v606_v20 = vrot.slane %v605_v19, 4  ;;  %v790_v19 = vpop.permute.xlu2 %789 }
 0x405   :  { %v608_v22 = vmul.f32 %v606_v20, %v587_v55  ;;  %v609_v23 = vmul.f32 %v606_v20, %v588_v21  ;;  %v610_v3 = vmul.f32 %v606_v20, %v589_v13  ;;  %v611_v24 = vmul.f32 %v606_v20, %v590_v17 }
 0x407   :  { %v616_v33 = vmul.f32 %v614_v26, %v608_v22  ;;  %v617_v11 = vmul.f32 %v614_v26, %v609_v23  ;;  %v618_v36 = vmul.f32 %v614_v26, %v610_v3  ;;  %v619_v37 = vmul.f32 %v614_v26, %v611_v24 }
 0x40b   :  { %v622_v40 = vpop.permute.xlu0 %621 }
 0x40c   :  { %v624_v34 = vadd.f32 %v622_v40, %v616_v33  ;;  %v625_v32 = vadd.f32 %v622_v40, %v617_v11  ;;  %v626_v18 = vadd.f32 %v622_v40, %v618_v36  ;;  %v627_v35 = vadd.f32 %v622_v40, %v619_v37 }
 0x40e   :  { %v628_v41 = vmax.f32 %v624_v34, 0.0  ;;  %v629_v42 = vmax.f32 %v625_v32, 0.0  ;;  %v630_v27 = vmax.f32 %v626_v18, 0.0  ;;  %v631_v44 = vmax.f32 %v627_v35, 0.0 }
 0x410   :  { %v632_v46 = vpack.c.bf16 %v628_v41, %v628_v41  ;;  %v633_v25 = vpack.c.bf16 %v629_v42, %v629_v42  ;;  %v634_v47 = vpack.c.bf16 %v630_v27, %v630_v27  ;;  %v635_v48 = vpack.c.bf16 %v631_v44, %v631_v44 }
 0x412   :  { %v644_v30 = vsel %vm490_vm6, %v632_v46, 0  ;;  %v647_v39 = vsel %vm490_vm6, %v633_v25, 0  ;;  %v650_v49 = vsel %vm490_vm6, %v634_v47, 0  ;;  %v653_v50 = vsel %vm490_vm6, %v635_v48, 0 }
 0x413   :  { %662 = vmatpush.bf16.msra.mxu0 %v644_v30  ;;  %676 = vmatpush.bf16.msra.mxu1 %v647_v39 }
 0x414   :  { %690 = vmatpush.bf16.msra.mxu2 %v650_v49  ;;  %704 = vmatpush.bf16.msra.mxu3 %v653_v50 }
 0x416   :  { %865 = vmatmul.msk.bf16.vlgmr.msra.gmra.mxu0 %vm639_vm2, %v638_v29  ;;  %866 = vmatmul.msk.bf16.vlgmr.msra.gmra.mxu1 %vm639_vm2, %v638_v29 }
 0x417   :  { %867 = vmatmul.msk.bf16.vlgmr.msra.gmra.mxu2 %vm639_vm2, %v638_v29  ;;  %868 = vmatmul.msk.bf16.vlgmr.msra.gmra.mxu3 %vm639_vm2, %v638_v29 }
 0x493   :  { %v1319_v52 = vpop.f32.mrf.mxu0  ;;  %v1321_v54 = vpop.f32.mrf.mxu1 }
 0x494   :  { %v711_v38 = vmul.f32 %v1319_v52, %v1319_v52  ;;  %v712_v31 = vmul.f32 %v1321_v54, %v1321_v54  ;;  %v719_v56 = vadd.f32 %v1321_v54, %v1319_v52 }
 0x496   :  { %v729_v58 = vadd.f32 %v712_v31, %v711_v38 }
 0x49a   :  { %v1329_v1 = vpop.f32.mrf.mxu2  ;;  %v1331_v28 = vpop.f32.mrf.mxu3 }
 0x49b   :  { %v713_v57 = vmul.f32 %v1329_v1, %v1329_v1  ;;  %v720_v15 = vadd.f32 %v719_v56, %v1329_v1  ;;  %v1336_v60 = vpop.f32.mrf.mxu0  ;;  %v1338_v61 = vpop.f32.mrf.mxu1  ;;  %v714_v45 = vmul.f32 %v1331_v28, %v1331_v28 }
 0x49c   :  { %v715_v63 = vmul.f32 %v1336_v60, %v1336_v60  ;;  %v716_v4 = vmul.f32 %v1338_v61, %v1338_v61  ;;  %v724_v7 = vadd.f32 %v1338_v61, %v1336_v60 }
 0x49d   :  { %v721_v43 = vadd.f32 %v720_v15, %v1331_v28  ;;  %v730_v62 = vadd.f32 %v729_v58, %v713_v57 }
 0x49e   :  { %v734_v12 = vadd.f32 %v716_v4, %v715_v63  ;;  %v903_v4 = vld [vmem:[%s1426_s0 + $0x8] sm:$0xff] }
 0x49f   :  { %722 = vadd.xlane.f32.xlu1 %v721_v43  ;;  %v731_v6 = vadd.f32 %v730_v62, %v714_v45  ;;  %v902_v62 = vld [vmem:[%s1426_s0] sm:$0xff] }
 0x4a1   :  { %732 = vadd.xlane.f32.xlu2 %v731_v6 }
 0x4a2   :  { %v1349_v8 = vpop.f32.mrf.mxu2  ;;  %v1351_v9 = vpop.f32.mrf.mxu3 }
 0x4a3   :  { %v717_v53 = vmul.f32 %v1349_v8, %v1349_v8  ;;  %v725_v59 = vadd.f32 %v724_v7, %v1349_v8  ;;  %v718_v14 = vmul.f32 %v1351_v9, %v1351_v9  ;;  %v904_v7 = vld [vmem:[%s1426_s0 + $0x10] sm:$0xff] }
 0x4a5   :  { %v726_v5 = vadd.f32 %v725_v59, %v1351_v9  ;;  %v735_v10 = vadd.f32 %v734_v12, %v717_v53 }
 0x4a7   :  { %727 = vadd.xlane.f32.xlu0 %v726_v5  ;;  %v736_v16 = vadd.f32 %v735_v10, %v718_v14 }
 0x4a9   :  { %737 = vadd.xlane.f32.xlu2 %v736_v16 }
 0x4b8   :  { %794 = vperm.xlu1 %891, %v1307_v2  }
 0x4bb   :  { %806 = vperm.xlu0 %892, %v1302_v0  }
 0x4c1   :  { %810 = vperm.xlu2 %893, %v1307_v2  }
 0x512   :  { %v723_v20 = vpop.xlane.xlu1 %722 }
 0x513   :  { %v739_v55 = vmul.f32 0.001953125, %v723_v20 }
 0x514   :  { %v733_v21 = vpop.xlane.xlu2 %732 }
 0x515   :  { %v743_v13 = vmul.f32 %v739_v55, %v739_v55  ;;  %v741_v17 = vmul.f32 0.001953125, %v733_v21  ;;  %v749_v44 = vsub.f32 %v1319_v52, %v739_v55  ;;  %v750_v46 = vsub.f32 %v1321_v54, %v739_v55 }
 0x516   :  { %v751_v25 = vsub.f32 %v1329_v1, %v739_v55  ;;  %v752_v47 = vsub.f32 %v1331_v28, %v739_v55 }
 0x517   :  { %v745_v22 = vsub.f32 %v741_v17, %v743_v13 }
 0x519   :  { %v747_v23 = vmax.f32 %v745_v22, 0.0 }
 0x51a   :  { %v728_v3 = vpop.xlane.xlu0 %727 }
 0x51b   :  { %v757_v24 = vadd.f32 1e-05, %v747_v23  ;;  %v1362_v26 = vmul.f32 0.001953125, %v728_v3 }
 0x51c   :  { %v738_v33 = vpop.xlane.xlu2 %737 }
 0x51d   :  { %898 = vrsqrt.f32 %v757_v24  ;;  %v744_v11 = vmul.f32 %v1362_v26, %v1362_v26  ;;  %v742_v0 = vmul.f32 0.001953125, %v738_v33  ;;  %vm765_vm4 = vweird.f32 %v757_v24 }
 0x51e   :  { %v753_v28 = vsub.f32 %v1336_v60, %v1362_v26  ;;  %v905_v60 = vld [vmem:[%s1426_s0 + $0x18] sm:$0xff]  ;;  %v754_v59 = vsub.f32 %v1338_v61, %v1362_v26  ;;  %v755_v14 = vsub.f32 %v1349_v8, %v1362_v26  ;;  %v756_v5 = vsub.f32 %v1351_v9, %v1362_v26 }
 0x51f   :  { %v746_v36 = vsub.f32 %v742_v0, %v744_v11 }
 0x521   :  { %v748_v2 = vmax.f32 %v746_v36, 0.0 }
 0x523   :  { %v899_v37 = vpop.eup %898  ;;  %v758_v40 = vadd.f32 1e-05, %v748_v2 }
 0x524   :  { %v760_v34 = vmul.f32 %v899_v37, %v757_v24  ;;  %vm766_vm3 = vweird.f32 %v899_v37  ;;  %v811_v61 = vpop.permute.xlu2 %810 }
 0x525   :  { %900 = vrsqrt.f32 %v758_v40  ;;  %vm767_vm5 = vmor %vm765_vm4, %vm766_vm3  ;;  %vm775_vm7 = vweird.f32 %v758_v40 }
 0x526   :  { %v761_v32 = vmul.f32 %v899_v37, %v760_v34 }
 0x528   :  { %v762_v18 = vmul.f32 0.5, %v761_v32 }
 0x52a   :  { %v763_v35 = vsub.f32 1.5, %v762_v18  ;;  %v795_v21 = vpop.permute.xlu1 %794 }
 0x52b   :  { %v901_v41 = vpop.eup %900 }
 0x52c   :  { %v764_v42 = vmul.f32 %v899_v37, %v763_v35  ;;  %v770_v27 = vmul.f32 %v901_v41, %v758_v40  ;;  %vm776_vm6 = vweird.f32 %v901_v41 }
 0x52d   :  { %v807_v38 = vpop.permute.xlu0 %806  ;;  %vm777_vm8 = vmor %vm775_vm7, %vm776_vm6 }
 0x52e   :  { %v768_v48 = vsel %vm767_vm5, %v899_v37, %v764_v42  ;;  %v771_v30 = vmul.f32 %v901_v41, %v770_v27 }
 0x52f   :  { %v779_v39 = vmul.f32 %v768_v48, %v749_v44  ;;  %v780_v49 = vmul.f32 %v768_v48, %v750_v46  ;;  %v781_v50 = vmul.f32 %v768_v48, %v751_v25  ;;  %v782_v29 = vmul.f32 %v768_v48, %v752_v47 }
 0x530   :  { %v772_v51 = vmul.f32 0.5, %v771_v30 }
 0x531   :  { %v797_v31 = vmul.f32 %v790_v19, %v779_v39  ;;  %v798_v56 = vmul.f32 %v790_v19, %v780_v49  ;;  %v799_v57 = vmul.f32 %v790_v19, %v781_v50  ;;  %v800_v15 = vmul.f32 %v790_v19, %v782_v29 }
 0x532   :  { %v773_v58 = vsub.f32 1.5, %v772_v51 }
 0x533   :  { %v813_v52 = vadd.f32 %v807_v38, %v797_v31  ;;  %v814_v54 = vadd.f32 %v807_v38, %v798_v56  ;;  %v815_v43 = vadd.f32 %v807_v38, %v799_v57  ;;  %v816_v1 = vadd.f32 %v807_v38, %v800_v15 }
 0x534   :  { %v774_v45 = vmul.f32 %v901_v41, %v773_v58 }
 0x535   :  { %v821_v63 = vadd.f32 %v902_v62, %v813_v52  ;;  %v822_v6 = vadd.f32 %v903_v4, %v814_v54  ;;  %v823_v12 = vadd.f32 %v904_v7, %v815_v43  ;;  %v824_v53 = vadd.f32 %v905_v60, %v816_v1 }
 0x536   :  { %v778_v10 = vsel %vm777_vm8, %v901_v41, %v774_v45 }
 0x537   :  { %v829_v16 = vmax.f32 %v821_v63, 0.0  ;;  %v830_v19 = vmax.f32 %v822_v6, 0.0  ;;  %v831_v20 = vmax.f32 %v823_v12, 0.0  ;;  %v832_v55 = vmax.f32 %v824_v53, 0.0 }
 0x538   :  { %v783_v13 = vmul.f32 %v778_v10, %v753_v28  ;;  %v784_v17 = vmul.f32 %v778_v10, %v754_v59  ;;  %v785_v22 = vmul.f32 %v778_v10, %v755_v14  ;;  %v786_v23 = vmul.f32 %v778_v10, %v756_v5 }
 0x539   :  { %837 = vst [vmem:[%s1429_s3] sm:$0xff] %v829_v16 }
 0x53a   :  { %838 = vst [vmem:[%s1429_s3 + $0x8] sm:$0xff] %v830_v19  ;;  %v801_v8 = vmul.f32 %v795_v21, %v783_v13  ;;  %v802_v9 = vmul.f32 %v795_v21, %v784_v17  ;;  %v803_v3 = vmul.f32 %v795_v21, %v785_v22  ;;  %v804_v24 = vmul.f32 %v795_v21, %v786_v23 }
 0x53b   :  { %839 = vst [vmem:[%s1429_s3 + $0x10] sm:$0xff] %v831_v20 }
 0x53c   :  { %840 = vst [vmem:[%s1429_s3 + $0x18] sm:$0xff] %v832_v55  ;;  %v817_v26 = vadd.f32 %v811_v61, %v801_v8  ;;  %v818_v33 = vadd.f32 %v811_v61, %v802_v9  ;;  %v819_v11 = vadd.f32 %v811_v61, %v803_v3  ;;  %v820_v0 = vadd.f32 %v811_v61, %v804_v24 }
 0x543   :  { %v906_v36 = vld [vmem:[%s1426_s0 + $0x20] sm:$0xff]  ;;  %v907_v37 = vld [vmem:[%s1426_s0 + $0x28] sm:$0xff]  ;;  %v908_v34 = vld [vmem:[%s1426_s0 + $0x30] sm:$0xff] }
 0x544   :  { %v825_v2 = vadd.f32 %v906_v36, %v817_v26  ;;  %v826_v40 = vadd.f32 %v907_v37, %v818_v33  ;;  %v827_v32 = vadd.f32 %v908_v34, %v819_v11  ;;  %v909_v18 = vld [vmem:[%s1426_s0 + $0x38] sm:$0xff] }
 0x545   :  { %v828_v35 = vadd.f32 %v909_v18, %v820_v0 }
 0x546   :  { %v833_v41 = vmax.f32 %v825_v2, 0.0  ;;  %v834_v42 = vmax.f32 %v826_v40, 0.0  ;;  %v835_v27 = vmax.f32 %v827_v32, 0.0 }
 0x547   :  { %v836_v44 = vmax.f32 %v828_v35, 0.0 }
 0x548   :  { %841 = vst [vmem:[%s1429_s3 + $0x20] sm:$0xff] %v833_v41 }
 0x549   :  { %842 = vst [vmem:[%s1429_s3 + $0x28] sm:$0xff] %v834_v42 }
 0x54a   :  { %843 = vst [vmem:[%s1429_s3 + $0x30] sm:$0xff] %v835_v27 }
 0x54b   :  { %844 = vst [vmem:[%s1429_s3 + $0x38] sm:$0xff] %v836_v44 }

</bundles_post_ra>
